<compile_context>
chip_gen: v6e
topology: v6e:2x2x1
jax: 0.10.0
libtpu: 0.0.40
codegen_flags: <defaults>
</compile_context>

<pallas_src>
import functools
import math

import jax
import jax.numpy as jnp
from jax import lax
from jax.experimental import pallas as pl
from jax.experimental.pallas import tpu as pltpu


_VMEM_WORKSET_BUDGET = 30 * 1024 * 1024   # per-grid-step pipeline working set
_VMEM_LIMIT_BYTES = 48 * 1024 * 1024      # scoped VMEM limit (v7x: 64 MiB phys)


def _round_up(x, m):
    return ((x + m - 1) // m) * m


def _down_conv_layer_kernel(xcol_ref, wa_ref, wb_ref, ba_ref, bb_ref,
                            w1_ref, b1_ref, out_ref):
    """One (batch, L-tile) grid step: strided conv (2 MXU matmuls) -> gate -> 1x1."""
    xc = xcol_ref[0]                                            # (kc_p, lt) bf16

    # Strided EqualConv1d as two fused MXU matmuls (weights pre-split into the
    # tanh / sigmoid halves -> no sublane slicing of the accumulator).
    xa = jnp.dot(wa_ref[...], xc, preferred_element_type=jnp.float32) + ba_ref[...]
    xb = jnp.dot(wb_ref[...], xc, preferred_element_type=jnp.float32) + bb_ref[...]

    # Gated activation in f32 (v5e-safe EUP/VPU path).
    gated = (jnp.tanh(xa) * jax.nn.sigmoid(xb)).astype(w1_ref.dtype)  # bf16

    # 1x1 output conv; sqrt(0.5) is already folded into w1 / b1.
    out = jnp.dot(w1_ref[...], gated, preferred_element_type=jnp.float32) + b1_ref[...]
    out_ref[0] = out.astype(out_ref.dtype)


def _pick_l_tile(l_out, kc_p, ch_p, cr_p, out_itemsize):
    """Largest lane tile (multiple of 128, dividing the padded length) whose
    per-step working set fits the VMEM budget."""
    lp = _round_up(max(l_out, 1), 128)

    def workset(lt):
        fp = 2 * kc_p * lt * 2                    # xcol tile (bf16), double-buffered
        fp += 2 * cr_p * lt * out_itemsize        # out tile, double-buffered
        fp += 2 * (2 * ch_p * kc_p + cr_p * ch_p) * 2   # weights (bf16, worst case 2 copies)
        fp += 2 * (2 * ch_p + cr_p) * 4           # biases (f32)
        fp += 2 * ch_p * lt * 4                   # xa, xb f32 accumulators
        fp += ch_p * lt * 2                       # gated (bf16)
        fp += cr_p * lt * 4                       # f32 pre-store temp
        return fp

    lt = 128
    for cand in (1024, 512, 256):
        if lp % cand == 0 and workset(cand) <= _VMEM_WORKSET_BUDGET:
            lt = cand
            break
    return lt, lp


def down_conv_layer(x, params, *, kernel_size=3, stride=2, padding=1,
                    out_dtype=None, single_buffer_weights=True,
                    fuse_im2col=True):
    """x: (B, C_res, L) -> (B, C_res, L_out).

    Call under jax.jit so the im2col producer sits in the same XLA computation
    as the pallas_call (required for allow_input_fusion to remove the slab's
    HBM round-trip)."""
    B, c_res, L = x.shape
    K = kernel_size
    conv_w = params["conv_w"]                    # (C_out, C_res, K)
    c_out = conv_w.shape[0]
    assert c_out % 2 == 0, "gate_channels must be even"
    c_half = c_out // 2
    out_dtype = x.dtype if out_dtype is None else out_dtype
    out_itemsize = jnp.dtype(out_dtype).itemsize

    scale = 1.0 / math.sqrt(c_res * K)           # EqualConv1d scale
    l_out = (L + 2 * padding - (K - 1) - 1) // stride + 1

    # Sublane-friendly channel padding (zeros; sliced off at the end).
    kc = K * c_res
    kc_p = _round_up(kc, 16)
    ch_p = _round_up(c_half, 16)
    cr_p = _round_up(c_res, 16)

    lt, lp = _pick_l_tile(l_out, kc_p, ch_p, cr_p, out_itemsize)
    n_lt = lp // lt

    # --- im2col taps (stride-2) over the padded input, lane-padded to lp output
    #     columns.  This whole producer is a single XLA fusion; with
    #     allow_input_fusion it feeds the kernel's input DMAs directly.
    need = stride * (lp - 1) + K                 # padded-input length required
    right = max(padding, need - padding - L)
    xp = jnp.pad(x, ((0, 0), (0, 0), (padding, right)))
    taps = [xp[:, :, k: k + stride * (lp - 1) + 1: stride] for k in range(K)]
    xcol = jnp.concatenate(taps, axis=1)         # (B, kc, lp)
    if kc_p > kc:
        xcol = jnp.pad(xcol, ((0, 0), (0, kc_p - kc), (0, 0)))
    xcol = xcol.astype(jnp.bfloat16)
    # NOTE: the conv input is quantized to bf16 for MXU rate / HBM bytes; keep
    # it f32 here if bit-closer parity with the f32 PyTorch layer is required.

    # --- weights: fold EqualConv1d scale, split tanh/sigmoid halves, fold
    #     sqrt(0.5) into the 1x1 weight/bias, pad channel dims, cast bf16.
    def _pad2(a, r, c):
        return jnp.pad(a, ((0, r - a.shape[0]), (0, c - a.shape[1])))

    w_flat = jnp.transpose(conv_w, (0, 2, 1)).reshape(c_out, kc) * scale
    wa = _pad2(w_flat[:c_half], ch_p, kc_p).astype(jnp.bfloat16)
    wb = _pad2(w_flat[c_half:], ch_p, kc_p).astype(jnp.bfloat16)
    conv_b = params["conv_b"].astype(jnp.float32)
    ba = _pad2(conv_b[:c_half].reshape(c_half, 1), ch_p, 1)
    bb = _pad2(conv_b[c_half:].reshape(c_half, 1), ch_p, 1)
    gain = math.sqrt(0.5)
    w1 = _pad2(params["w1x1"].reshape(c_res, c_half).astype(jnp.float32) * gain,
               cr_p, ch_p).astype(jnp.bfloat16)
    b1 = _pad2((params["b1x1"].astype(jnp.float32) * gain).reshape(c_res, 1),
               cr_p, 1)

    def _const_spec(shape):
        idx = lambda b, t, _s=shape: (0,) * len(_s)
        if single_buffer_weights:
            # Grid-invariant operand: one VMEM copy, no double buffering.
            return pl.BlockSpec(shape, idx, pipeline_mode=pl.Buffered(1))
        return pl.BlockSpec(shape, idx)

    cost = pl.CostEstimate(
        flops=2 * B * lp * (2 * ch_p * kc_p + cr_p * ch_p),
        transcendentals=2 * B * ch_p * lp,
        bytes_accessed=int(xcol.size * 2
                           + B * cr_p * lp * out_itemsize
                           + (wa.size + wb.size + w1.size) * 2
                           + (ba.size + bb.size + b1.size) * 4),
    )

    compiler_kwargs = dict(
        dimension_semantics=("parallel", "parallel"),
        vmem_limit_bytes=_VMEM_LIMIT_BYTES,
    )
    if fuse_im2col:
        # Allow XLA to fuse the pad/strided-slice/concat/cast producer of xcol
        # into the pallas_call's input DMAs (no HBM slab write + re-read).
        compiler_kwargs["allow_input_fusion"] = [True] + [False] * 6

    out_p = pl.pallas_call(
        _down_conv_layer_kernel,
        out_shape=jax.ShapeDtypeStruct((B, cr_p, lp), out_dtype),
        grid_spec=pltpu.PrefetchScalarGridSpec(
            num_scalar_prefetch=0,
            grid=(B, n_lt),
            in_specs=[
                pl.BlockSpec((1, kc_p, lt), lambda b, t: (b, 0, t)),  # xcol tile
                _const_spec((ch_p, kc_p)),                            # wa (tanh half)
                _const_spec((ch_p, kc_p)),                            # wb (sigmoid half)
                _const_spec((ch_p, 1)),                               # ba
                _const_spec((ch_p, 1)),                               # bb
                _const_spec((cr_p, ch_p)),                            # w1x1 * sqrt(0.5)
                _const_spec((cr_p, 1)),                               # b1x1 * sqrt(0.5)
            ],
            out_specs=pl.BlockSpec((1, cr_p, lt), lambda b, t: (b, 0, t)),
        ),
        compiler_params=pltpu.CompilerParams(**compiler_kwargs),
        cost_estimate=cost,
    )(xcol, wa, wb, ba, bb, w1, b1)

    # Drop the channel / length zero-padding.
    return out_p[:, :c_res, :l_out]


def _reference(x, params, *, kernel_size=3, stride=2, padding=1):
    """Pure-JAX f32 mirror of DownConvLayer.forward (NCL layout)."""
    B, c_res, L = x.shape
    K = kernel_size
    scale = 1.0 / math.sqrt(c_res * K)
    conv_w = params["conv_w"]
    c_out = conv_w.shape[0]
    c_half = c_out // 2

    out = lax.conv_general_dilated(
        x, conv_w * scale, window_strides=(stride,),
        padding=[(padding, padding)],
        dimension_numbers=("NCH", "OIH", "NCH"))
    out = out + params["conv_b"][None, :, None]

    xa, xb = out[:, :c_half], out[:, c_half:]
    gated = jnp.tanh(xa) * jax.nn.sigmoid(xb)

    w1 = params["w1x1"].reshape(c_res, c_half)
    out = jnp.einsum("of,bfl->bol", w1, gated) + params["b1x1"].reshape(1, c_res, 1)
    return out * math.sqrt(0.5)


if __name__ == "__main__":
    B = 2
    resid_channels = 4        # C_res (input channels == 1x1 output channels)
    gate_channels = 8         # C_out of the strided conv (split for gating)
    L = 16
    kernel_size, stride, padding = 3, 2, 1

    key = jax.random.PRNGKey(0)
    kx, k1, k2, k3, k4 = jax.random.split(key, 5)

    x = jax.random.normal(kx, (B, resid_channels, L), jnp.float32)
    params = {
        # EqualConv1d(resid -> gate, K=3, stride=2, padding=1)
        "conv_w": jax.random.normal(
            k1, (gate_channels, resid_channels, kernel_size), jnp.float32),
        "conv_b": 0.1 * jax.random.normal(k2, (gate_channels,), jnp.float32),
        # Conv1d1x1(gate//2 -> resid): weight (resid, gate//2, 1), bias (resid,)
        "w1x1": 0.1 * jax.random.normal(
            k3, (resid_channels, gate_channels // 2, 1), jnp.float32),
        "b1x1": 0.1 * jax.random.normal(k4, (resid_channels,), jnp.float32),
    }

    # jit the whole layer so the im2col producer and the pallas_call are in one
    # XLA computation (lets allow_input_fusion remove the HBM slab).
    try:
        run = jax.jit(down_conv_layer)
        out = jax.block_until_ready(run(x, params))
    except Exception:
        # Conservative fallback for older jax / Mosaic that lack
        # BlockSpec.pipeline_mode / Buffered(1) or allow_input_fusion.
        run = jax.jit(functools.partial(down_conv_layer,
                                        single_buffer_weights=False,
                                        fuse_im2col=False))
        out = jax.block_until_ready(run(x, params))

    ref = _reference(x, params, kernel_size=kernel_size,
                     stride=stride, padding=padding)
    l_out = (L + 2 * padding - (kernel_size - 1) - 1) // stride + 1
    assert out.shape == (B, resid_channels, l_out), out.shape
    err = float(jnp.max(jnp.abs(out - ref)))
    # bf16 MXU operands with f32 accumulation -> loosened tolerance vs f32 ref.
    assert err < 2e-2, f"max err {err}"

    print("KERNEL_OK")
</pallas_src>

<mosaic_0001>
module attributes {stable_mosaic.version = 11 : i64} {
  func.func @_down_conv_layer_kernel(%arg0: i32, %arg1: i32, %arg2: memref<1x16x128xbf16, #tpu.memory_space<vmem>>, %arg3: memref<16x16xbf16, #tpu.memory_space<vmem>>, %arg4: memref<16x16xbf16, #tpu.memory_space<vmem>>, %arg5: memref<16x1xf32, #tpu.memory_space<vmem>>, %arg6: memref<16x1xf32, #tpu.memory_space<vmem>>, %arg7: memref<16x16xbf16, #tpu.memory_space<vmem>>, %arg8: memref<16x1xf32, #tpu.memory_space<vmem>>, %arg9: memref<1x16x128xf32, #tpu.memory_space<vmem>>) attributes {dimension_semantics = [#tpu.dimension_semantics<parallel>, #tpu.dimension_semantics<parallel>], iteration_bounds = array<i64: 2, 1>, scalar_prefetch = 0 : i64, scratch_operands = 0 : i64, tpu.core_type = #tpu.core_type<tc>, window_params = [{transform_indices = @transform_0, window_bounds = array<i64: 1, 16, 128>}, {pipeline_mode = #tpu.pipeline_mode<synchronous>, transform_indices = @transform_1, window_bounds = array<i64: 16, 16>}, {pipeline_mode = #tpu.pipeline_mode<synchronous>, transform_indices = @transform_2, window_bounds = array<i64: 16, 16>}, {pipeline_mode = #tpu.pipeline_mode<synchronous>, transform_indices = @transform_3, window_bounds = array<i64: 16, 1>}, {pipeline_mode = #tpu.pipeline_mode<synchronous>, transform_indices = @transform_4, window_bounds = array<i64: 16, 1>}, {pipeline_mode = #tpu.pipeline_mode<synchronous>, transform_indices = @transform_5, window_bounds = array<i64: 16, 16>}, {pipeline_mode = #tpu.pipeline_mode<synchronous>, transform_indices = @transform_6, window_bounds = array<i64: 16, 1>}, {transform_indices = @transform_7, window_bounds = array<i64: 1, 16, 128>}]} {
    %c0 = arith.constant 0 : index
    %c0_0 = arith.constant 0 : index
    %c0_1 = arith.constant 0 : index
    %0 = vector.load %arg2[%c0, %c0_0, %c0_1] : memref<1x16x128xbf16, #tpu.memory_space<vmem>>, vector<1x16x128xbf16>
    %1 = vector.shape_cast %0 : vector<1x16x128xbf16> to vector<16x128xbf16>
    %c0_2 = arith.constant 0 : index
    %c0_3 = arith.constant 0 : index
    %2 = vector.load %arg3[%c0_2, %c0_3] : memref<16x16xbf16, #tpu.memory_space<vmem>>, vector<16x16xbf16>
    %cst = arith.constant dense<0.000000e+00> : vector<16x128xf32>
    %3 = tpu.matmul %2, %1, %cst {dimension_numbers = #tpu.dot_dimension_numbers<[1], [0], [0], [1], [0, 0, 1, 1], [], []>} : vector<16x16xbf16>, vector<16x128xbf16>, vector<16x128xf32> -> vector<16x128xf32>
    %c0_4 = arith.constant 0 : index
    %c0_5 = arith.constant 0 : index
    %4 = vector.load %arg5[%c0_4, %c0_5] : memref<16x1xf32, #tpu.memory_space<vmem>>, vector<16x1xf32>
    %5 = vector.broadcast %4 : vector<16x1xf32> to vector<16x128xf32>
    %6 = arith.addf %3, %5 : vector<16x128xf32>
    %c0_6 = arith.constant 0 : index
    %c0_7 = arith.constant 0 : index
    %7 = vector.load %arg4[%c0_6, %c0_7] : memref<16x16xbf16, #tpu.memory_space<vmem>>, vector<16x16xbf16>
    %cst_8 = arith.constant dense<0.000000e+00> : vector<16x128xf32>
    %8 = tpu.matmul %7, %1, %cst_8 {dimension_numbers = #tpu.dot_dimension_numbers<[1], [0], [0], [1], [0, 0, 1, 1], [], []>} : vector<16x16xbf16>, vector<16x128xbf16>, vector<16x128xf32> -> vector<16x128xf32>
    %c0_9 = arith.constant 0 : index
    %c0_10 = arith.constant 0 : index
    %9 = vector.load %arg6[%c0_9, %c0_10] : memref<16x1xf32, #tpu.memory_space<vmem>>, vector<16x1xf32>
    %10 = vector.broadcast %9 : vector<16x1xf32> to vector<16x128xf32>
    %11 = arith.addf %8, %10 : vector<16x128xf32>
    %12 = math.tanh %6 : vector<16x128xf32>
    %13 = arith.negf %11 : vector<16x128xf32>
    %14 = math.exp %13 : vector<16x128xf32>
    %cst_11 = arith.constant 1.000000e+00 : f32
    %15 = vector.broadcast %cst_11 : f32 to vector<16x128xf32>
    %16 = arith.addf %15, %14 : vector<16x128xf32>
    %17 = arith.divf %15, %16 : vector<16x128xf32>
    %18 = arith.mulf %12, %17 : vector<16x128xf32>
    %19 = arith.truncf %18 : vector<16x128xf32> to vector<16x128xbf16>
    %c0_12 = arith.constant 0 : index
    %c0_13 = arith.constant 0 : index
    %20 = vector.load %arg7[%c0_12, %c0_13] : memref<16x16xbf16, #tpu.memory_space<vmem>>, vector<16x16xbf16>
    %cst_14 = arith.constant dense<0.000000e+00> : vector<16x128xf32>
    %21 = tpu.matmul %20, %19, %cst_14 {dimension_numbers = #tpu.dot_dimension_numbers<[1], [0], [0], [1], [0, 0, 1, 1], [], []>} : vector<16x16xbf16>, vector<16x128xbf16>, vector<16x128xf32> -> vector<16x128xf32>
    %c0_15 = arith.constant 0 : index
    %c0_16 = arith.constant 0 : index
    %22 = vector.load %arg8[%c0_15, %c0_16] : memref<16x1xf32, #tpu.memory_space<vmem>>, vector<16x1xf32>
    %23 = vector.broadcast %22 : vector<16x1xf32> to vector<16x128xf32>
    %24 = arith.addf %21, %23 : vector<16x128xf32>
    %c0_17 = arith.constant 0 : index
    %c0_18 = arith.constant 0 : index
    %c0_19 = arith.constant 0 : index
    %25 = vector.load %arg9[%c0_17, %c0_18, %c0_19] : memref<1x16x128xf32, #tpu.memory_space<vmem>>, vector<1x16x128xf32>
    %26 = vector.shape_cast %25 : vector<1x16x128xf32> to vector<16x128xf32>
    %27 = vector.shape_cast %24 : vector<16x128xf32> to vector<1x16x128xf32>
    tpu.vector_store %arg9[%c0_17, %c0_18, %c0_19], %27 {strides = array<i32>} : memref<1x16x128xf32, #tpu.memory_space<vmem>>, vector<1x16x128xf32>,
    return
  }
  func.func @transform_0(%arg0: i32, %arg1: i32) -> (i32, i32, i32) {
    %c0_i32 = arith.constant 0 : i32
    %c0_i32_0 = arith.constant 0 : i32
    return %arg0, %c0_i32, %arg1 : i32, i32, i32
  }
  func.func @transform_1(%arg0: i32, %arg1: i32) -> (i32, i32) {
    %c0_i32 = arith.constant 0 : i32
    %c0_i32_0 = arith.constant 0 : i32
    %c0_i32_1 = arith.constant 0 : i32
    return %c0_i32, %c0_i32_0 : i32, i32
  }
  func.func @transform_2(%arg0: i32, %arg1: i32) -> (i32, i32) {
    %c0_i32 = arith.constant 0 : i32
    %c0_i32_0 = arith.constant 0 : i32
    %c0_i32_1 = arith.constant 0 : i32
    return %c0_i32, %c0_i32_0 : i32, i32
  }
  func.func @transform_3(%arg0: i32, %arg1: i32) -> (i32, i32) {
    %c0_i32 = arith.constant 0 : i32
    %c0_i32_0 = arith.constant 0 : i32
    %c0_i32_1 = arith.constant 0 : i32
    return %c0_i32, %c0_i32_0 : i32, i32
  }
  func.func @transform_4(%arg0: i32, %arg1: i32) -> (i32, i32) {
    %c0_i32 = arith.constant 0 : i32
    %c0_i32_0 = arith.constant 0 : i32
    %c0_i32_1 = arith.constant 0 : i32
    return %c0_i32, %c0_i32_0 : i32, i32
  }
  func.func @transform_5(%arg0: i32, %arg1: i32) -> (i32, i32) {
    %c0_i32 = arith.constant 0 : i32
    %c0_i32_0 = arith.constant 0 : i32
    %c0_i32_1 = arith.constant 0 : i32
    return %c0_i32, %c0_i32_0 : i32, i32
  }
  func.func @transform_6(%arg0: i32, %arg1: i32) -> (i32, i32) {
    %c0_i32 = arith.constant 0 : i32
    %c0_i32_0 = arith.constant 0 : i32
    %c0_i32_1 = arith.constant 0 : i32
    return %c0_i32, %c0_i32_0 : i32, i32
  }
  func.func @transform_7(%arg0: i32, %arg1: i32) -> (i32, i32, i32) {
    %c0_i32 = arith.constant 0 : i32
    %c0_i32_0 = arith.constant 0 : i32
    return %arg0, %c0_i32, %arg1 : i32, i32, i32
  }
}

module attributes {stable_mosaic.version = 11 : i64} {
  func.func @_down_conv_layer_kernel(%arg0: i32, %arg1: i32, %arg2: memref<1x16x128xbf16, #tpu.memory_space<vmem>>, %arg3: memref<16x16xbf16, #tpu.memory_space<vmem>>, %arg4: memref<16x16xbf16, #tpu.memory_space<vmem>>, %arg5: memref<16x1xf32, #tpu.memory_space<vmem>>, %arg6: memref<16x1xf32, #tpu.memory_space<vmem>>, %arg7: memref<16x16xbf16, #tpu.memory_space<vmem>>, %arg8: memref<16x1xf32, #tpu.memory_space<vmem>>, %arg9: memref<1x16x128xf32, #tpu.memory_space<vmem>>) attributes {dimension_semantics = [#tpu.dimension_semantics<parallel>, #tpu.dimension_semantics<parallel>], iteration_bounds = array<i64: 2, 1>, scalar_prefetch = 0 : i64, scratch_operands = 0 : i64, tpu.core_type = #tpu.core_type<tc>, window_params = [{transform_indices = @transform_0, window_bounds = array<i64: 1, 16, 128>}, {pipeline_mode = #tpu.pipeline_mode<synchronous>, transform_indices = @transform_1, window_bounds = array<i64: 16, 16>}, {pipeline_mode = #tpu.pipeline_mode<synchronous>, transform_indices = @transform_2, window_bounds = array<i64: 16, 16>}, {pipeline_mode = #tpu.pipeline_mode<synchronous>, transform_indices = @transform_3, window_bounds = array<i64: 16, 1>}, {pipeline_mode = #tpu.pipeline_mode<synchronous>, transform_indices = @transform_4, window_bounds = array<i64: 16, 1>}, {pipeline_mode = #tpu.pipeline_mode<synchronous>, transform_indices = @transform_5, window_bounds = array<i64: 16, 16>}, {pipeline_mode = #tpu.pipeline_mode<synchronous>, transform_indices = @transform_6, window_bounds = array<i64: 16, 1>}, {transform_indices = @transform_7, window_bounds = array<i64: 1, 16, 128>}]} {
    %c0 = arith.constant 0 : index
    %c0_0 = arith.constant 0 : index
    %c0_1 = arith.constant 0 : index
    %0 = vector.load %arg2[%c0, %c0_0, %c0_1] : memref<1x16x128xbf16, #tpu.memory_space<vmem>>, vector<1x16x128xbf16>
    %1 = vector.shape_cast %0 : vector<1x16x128xbf16> to vector<16x128xbf16>
    %c0_2 = arith.constant 0 : index
    %c0_3 = arith.constant 0 : index
    %2 = vector.load %arg3[%c0_2, %c0_3] : memref<16x16xbf16, #tpu.memory_space<vmem>>, vector<16x16xbf16>
    %cst = arith.constant dense<0.000000e+00> : vector<16x128xf32>
    %3 = tpu.matmul %2, %1, %cst {dimension_numbers = #tpu.dot_dimension_numbers<[1], [0], [0], [1], [0, 0, 1, 1], [], []>} : vector<16x16xbf16>, vector<16x128xbf16>, vector<16x128xf32> -> vector<16x128xf32>
    %c0_4 = arith.constant 0 : index
    %c0_5 = arith.constant 0 : index
    %4 = vector.load %arg5[%c0_4, %c0_5] : memref<16x1xf32, #tpu.memory_space<vmem>>, vector<16x1xf32>
    %5 = vector.broadcast %4 : vector<16x1xf32> to vector<16x128xf32>
    %6 = arith.addf %3, %5 : vector<16x128xf32>
    %c0_6 = arith.constant 0 : index
    %c0_7 = arith.constant 0 : index
    %7 = vector.load %arg4[%c0_6, %c0_7] : memref<16x16xbf16, #tpu.memory_space<vmem>>, vector<16x16xbf16>
    %cst_8 = arith.constant dense<0.000000e+00> : vector<16x128xf32>
    %8 = tpu.matmul %7, %1, %cst_8 {dimension_numbers = #tpu.dot_dimension_numbers<[1], [0], [0], [1], [0, 0, 1, 1], [], []>} : vector<16x16xbf16>, vector<16x128xbf16>, vector<16x128xf32> -> vector<16x128xf32>
    %c0_9 = arith.constant 0 : index
    %c0_10 = arith.constant 0 : index
    %9 = vector.load %arg6[%c0_9, %c0_10] : memref<16x1xf32, #tpu.memory_space<vmem>>, vector<16x1xf32>
    %10 = vector.broadcast %9 : vector<16x1xf32> to vector<16x128xf32>
    %11 = arith.addf %8, %10 : vector<16x128xf32>
    %12 = math.tanh %6 : vector<16x128xf32>
    %13 = arith.negf %11 : vector<16x128xf32>
    %14 = math.exp %13 : vector<16x128xf32>
    %cst_11 = arith.constant 1.000000e+00 : f32
    %15 = vector.broadcast %cst_11 : f32 to vector<16x128xf32>
    %16 = arith.addf %15, %14 : vector<16x128xf32>
    %17 = arith.divf %15, %16 : vector<16x128xf32>
    %18 = arith.mulf %12, %17 : vector<16x128xf32>
    %19 = arith.truncf %18 : vector<16x128xf32> to vector<16x128xbf16>
    %c0_12 = arith.constant 0 : index
    %c0_13 = arith.constant 0 : index
    %20 = vector.load %arg7[%c0_12, %c0_13] : memref<16x16xbf16, #tpu.memory_space<vmem>>, vector<16x16xbf16>
    %cst_14 = arith.constant dense<0.000000e+00> : vector<16x128xf32>
    %21 = tpu.matmul %20, %19, %cst_14 {dimension_numbers = #tpu.dot_dimension_numbers<[1], [0], [0], [1], [0, 0, 1, 1], [], []>} : vector<16x16xbf16>, vector<16x128xbf16>, vector<16x128xf32> -> vector<16x128xf32>
    %c0_15 = arith.constant 0 : index
    %c0_16 = arith.constant 0 : index
    %22 = vector.load %arg8[%c0_15, %c0_16] : memref<16x1xf32, #tpu.memory_space<vmem>>, vector<16x1xf32>
    %23 = vector.broadcast %22 : vector<16x1xf32> to vector<16x128xf32>
    %24 = arith.addf %21, %23 : vector<16x128xf32>
    %c0_17 = arith.constant 0 : index
    %c0_18 = arith.constant 0 : index
    %c0_19 = arith.constant 0 : index
    %25 = vector.load %arg9[%c0_17, %c0_18, %c0_19] : memref<1x16x128xf32, #tpu.memory_space<vmem>>, vector<1x16x128xf32>
    %26 = vector.shape_cast %25 : vector<1x16x128xf32> to vector<16x128xf32>
    %27 = vector.shape_cast %24 : vector<16x128xf32> to vector<1x16x128xf32>
    tpu.vector_store %arg9[%c0_17, %c0_18, %c0_19], %27 {strides = array<i32>} : memref<1x16x128xf32, #tpu.memory_space<vmem>>, vector<1x16x128xf32>,
    return
  }
  func.func @transform_0(%arg0: i32, %arg1: i32) -> (i32, i32, i32) {
    %c0_i32 = arith.constant 0 : i32
    %c0_i32_0 = arith.constant 0 : i32
    return %arg0, %c0_i32, %arg1 : i32, i32, i32
  }
  func.func @transform_1(%arg0: i32, %arg1: i32) -> (i32, i32) {
    %c0_i32 = arith.constant 0 : i32
    %c0_i32_0 = arith.constant 0 : i32
    %c0_i32_1 = arith.constant 0 : i32
    return %c0_i32, %c0_i32_0 : i32, i32
  }
  func.func @transform_2(%arg0: i32, %arg1: i32) -> (i32, i32) {
    %c0_i32 = arith.constant 0 : i32
    %c0_i32_0 = arith.constant 0 : i32
    %c0_i32_1 = arith.constant 0 : i32
    return %c0_i32, %c0_i32_0 : i32, i32
  }
  func.func @transform_3(%arg0: i32, %arg1: i32) -> (i32, i32) {
    %c0_i32 = arith.constant 0 : i32
    %c0_i32_0 = arith.constant 0 : i32
    %c0_i32_1 = arith.constant 0 : i32
    return %c0_i32, %c0_i32_0 : i32, i32
  }
  func.func @transform_4(%arg0: i32, %arg1: i32) -> (i32, i32) {
    %c0_i32 = arith.constant 0 : i32
    %c0_i32_0 = arith.constant 0 : i32
    %c0_i32_1 = arith.constant 0 : i32
    return %c0_i32, %c0_i32_0 : i32, i32
  }
  func.func @transform_5(%arg0: i32, %arg1: i32) -> (i32, i32) {
    %c0_i32 = arith.constant 0 : i32
    %c0_i32_0 = arith.constant 0 : i32
    %c0_i32_1 = arith.constant 0 : i32
    return %c0_i32, %c0_i32_0 : i32, i32
  }
  func.func @transform_6(%arg0: i32, %arg1: i32) -> (i32, i32) {
    %c0_i32 = arith.constant 0 : i32
    %c0_i32_0 = arith.constant 0 : i32
    %c0_i32_1 = arith.constant 0 : i32
    return %c0_i32, %c0_i32_0 : i32, i32
  }
  func.func @transform_7(%arg0: i32, %arg1: i32) -> (i32, i32, i32) {
    %c0_i32 = arith.constant 0 : i32
    %c0_i32_0 = arith.constant 0 : i32
    return %arg0, %c0_i32, %arg1 : i32, i32, i32
  }
}

</mosaic_0001>

<bundles_post_ra>
// kernel: down_conv_layer.2
= control target key start
LH: loop header
LB: loop body
LE: loop exit
PB: predicated region body
PF: predicated region fallthrough
CT: control target
= control target key end

     0   :  { %s1150_s27 = smov 0   ;;  %s1152_s28 = smov 0   ;;  %s1277_s0 = inlined_call_operand.vmem [shape: bf16[16,16], index: 0, kind: input, shape index: {}]   ;;  %s1278_s1 = inlined_call_operand.vmem [shape: bf16[16,16], index: 1, kind: input, shape index: {}]   ;;  %s1279_s2 = inlined_call_operand.vmem [shape: f32[16,1], index: 2, kind: input, shape index: {}]   ;;  %s1280_s3 = inlined_call_operand.vmem [shape: f32[16,1], index: 3, kind: input, shape index: {}]   ;;  %s1281_s4 = inlined_call_operand.vmem [shape: bf16[16,16], index: 4, kind: input, shape index: {}]   ;;  %s1282_s5 = inlined_call_operand.vmem [shape: f32[16,1], index: 5, kind: input, shape index: {}]   ;;  %s1283_s6 = inlined_call_operand.vmem [shape: bf16[2,4,128], index: 6, kind: input, shape index: {}]   ;;  %s1284_s7 = inlined_call_operand.<no memory space> [shape: bf16[], index: 7, kind: input, shape index: {}]   ;;  %s1285_s8 = inlined_call_operand.vmem [shape: bf16[2,4,128], index: 8, kind: input, shape index: {}]   ;;  %s1286_s9 = inlined_call_operand.<no memory space> [shape: s32[], index: 9, kind: input, shape index: {}]   ;;  %s1287_s10 = inlined_call_operand.vmem [shape: bf16[2,4,128], index: 10, kind: input, shape index: {}]   ;;  %s1288_s11 = inlined_call_operand.<no memory space> [shape: bf16[], index: 11, kind: input, shape index: {}]   ;;  %s1289_s12 = inlined_call_operand.vmem [shape: f32[2,16,128], index: 12, kind: output, shape index: {}]  }
   0x1   :  { %v17_v0 = vstv %s1284_s7  ;;  %v27_v1 = vstv %s1286_s9  ;;  %v33_v2 = vstv %s1288_s11  ;;  %s1154_s29 = smov 0  }
   0x2   :  { %v1146_v3 = vunpack.i.l.bf16 %v17_v0  ;;  %v1148_v4 = vunpack.i.l.bf16 %v33_v2 }
   0x3 LB: > { %s55_s7 = sadd.s32 1, %s1063_s28  ;;  %p958_p0 = scmp.ge.s32.totalorder %s1067_s29, 1  ;;  %s1067_s29 = sphi %s1154_s29, %s43_s29   ;;  %s1063_s28 = sphi %s1152_s28, %s1295_s28   ;;  %s1059_s27 = sphi %s1150_s27, %s1294_s27  }
   0x4   : > { %p57_p1 = scmp.ge.s32.totalorder %s55_s7, 2  ;;  %p383_p2 = scmp.lt.s32.totalorder %s1067_s29, 3 }
   0x6   : > { %s1297_s7 = smov (%p57_p1, %s55_s7), 0  ;;  %p384_p3 = pnand %p958_p0, %p383_p2 }
   0x8   : > { %387 = sbr.rel (%p384_p3) target bundleno = 482 (0x1e2), region = 56 }
   0xd   : > { %p453_p4 = scmp.lt.s32.totalorder %s1059_s27, 1  ;;  %v523_v5 = vlaneseq  ;;  %v1069_v6 = vmov 0.0   ;;  %vm1070_vm0 = vmmov 0   ;;  %v1071_v8 = vmov 0   ;;  %v695_v9 = vld [vmem:[%s1280_s3] sm:$0xff]  ;;  %v696_v12 = vld [vmem:[%s1280_s3 + $0x8] sm:$0xff] }
   0xe   : > { %988 = vmatprep.subr.bf16.mxu1 %v1069_v6  ;;  %990 = vmatprep.mubr.msk.bf16.mxu1 %vm1070_vm0, %v1069_v6  ;;  %v625_v11 = vld [vmem:[%s1279_s2] sm:$0xff]  ;;  %v626_v15 = vld [vmem:[%s1279_s2 + $0x8] sm:$0xff]  ;;  %vm528_vm2 = vcmask 1043456   ;;  %vm648_vm6 = vcmask 130048  }
   0xf   : > { %s1299_s27 = smov (!%p453_p4, %s1059_s27), 1  ;;  %v524_v7 = vshrl.u32 %v523_v5, 7  ;;  %982 = vmatprep.subr.bf16.mxu0 %v1069_v6  ;;  %984 = vmatprep.mubr.msk.bf16.mxu0 %vm1070_vm0, %v1069_v6  ;;  %v775_v23 = vld [vmem:[%s1282_s5] sm:$0xff]  ;;  %v776_v28 = vld [vmem:[%s1282_s5 + $0x8] sm:$0xff] }
  0x10   : > { %1027 = vset.pattern.permute.xlu0 %v1071_v8  ;;  %1028 = vset.pattern.permute.xlu1 %v1071_v8  ;;  %s959_s13 = sshll.u32 %s1299_s27, 1  ;;  %v1030_v44 = vld [vmem:[%s1278_s1] sm:$0xff]   ;;  %s975_s11 = sshll.u32 %s1299_s27, 4 }
  0x11   : > { %v525_v10 = vadd.s32 8, %v524_v7  ;;  %699 = vperm.xlu0 %1027, %v695_v9   ;;  %s462_s18 = scalar_lea.vmem %s1283_s6, %s959_s13  ;;  %s478_s21 = scalar_lea.vmem %s1285_s8, %s959_s13  ;;  %629 = vperm.xlu1 %1028, %v625_v11   ;;  %vm543_vm3 = vcmp.lt.s32.totalorder %v524_v7, 4  ;;  %vm1202_vm4 = vcmp.lt.s32.totalorder %v524_v7, %v27_v1  ;;  %v1031_v45 = vld [vmem:[%s1277_s0] sm:$0xff]  }
  0x12   : > { %s488_s26 = scalar_lea.vmem %s1287_s10, %s959_s13  ;;  %v507_v13 = vld [vmem:[%s462_s18] sm:$0x3]  ;;  %v568_v34 = vsel %vm1202_vm4, %v1146_v3, %v1148_v4  ;;  %s496_s15 = scalar_lea.vmem %s1289_s12, %s975_s11 }
  0x13   : > { %v520_v14 = vld [vmem:[%s478_s21] sm:$0x3]  ;;  %vm526_vm1 = vcmp.lt.s32.totalorder %v525_v10, 12  ;;  %v508_v16 = vunpack.c.l.bf16 %v507_v13  ;;  %vm1210_vm5 = vcmp.lt.s32.totalorder %v525_v10, %v27_v1 }
  0x14   : > { %v521_v17 = vunpack.c.l.bf16 %v520_v14  ;;  %v537_v18 = vld [vmem:[%s488_s26] sm:$0x3]  ;;  %v597_v32 = vsel %vm1210_vm5, %v1146_v3, %v1148_v4 }
  0x15   : > { %v538_v19 = vunpack.c.l.bf16 %v537_v18  ;;  %704 = vperm.xlu0 %1027, %v696_v12   ;;  %634 = vperm.xlu1 %1028, %v626_v15   ;;  %v582_v26 = vsel %vm526_vm1, %v508_v16, %v1146_v3  ;;  %v1032_v14 = vld [vmem:[%s1281_s4] sm:$0xff]  }
  0x16   : > { %v527_v22 = vsel %vm526_vm1, %v521_v17, %v1146_v3  ;;  %v609_v36 = vsel %vm1210_vm5, %v582_v26, %v1148_v4 }
  0x17   : > { %v529_v24 = vsel %vm528_vm2, %v527_v22, %v1146_v3  ;;  %v544_v25 = vsel %vm543_vm3, %v538_v19, %v1146_v3  ;;  %v584_v27 = vsel %vm528_vm2, %v1146_v3, %v527_v22 }
  0x18   : > { %v530_v29 = vrot.slane %v529_v24, 4  ;;  %v556_v30 = vsel %vm1202_vm4, %v544_v25, %v1148_v4  ;;  %v585_v31 = vrot.slane %v584_v27, 4 }
  0x19   : > { %779 = vperm.xlu0 %1027, %v775_v23   ;;  %784 = vperm.xlu1 %1028, %v776_v28  }
  0x1a   : > { %v560_v33 = vsel %vm1202_vm4, %v530_v29, %v1148_v4  ;;  %v601_v35 = vsel %vm1210_vm5, %v585_v31, %v1148_v4 }
  0x1b   : > { %v564_v37 = vmax.f32 %v556_v30, %v560_v33  ;;  %v605_v38 = vmax.f32 %v597_v32, %v601_v35 }
  0x1d   : > { %v572_v39 = vmax.f32 %v564_v37, %v568_v34  ;;  %v613_v40 = vmax.f32 %v605_v38, %v609_v36 }
  0x1f   : > { %v574_v41 = vpack.c.bf16 %v1069_v6, %v572_v39  ;;  %v616_v42 = vpack.c.bf16 %v1069_v6, %v613_v40 }
  0x21   : > { %577 = vst [vmem:[#allocation17] sm:$0xf] %v574_v41  ;;  %619 = vst [vmem:[#allocation17 + $0x4] sm:$0xf] %v616_v42 }
  0x28   : > { %v1029_v43 = vld [vmem:[#allocation17] sm:$0xff]  }
  0x29   : > { %989 = vmatpush3.bf16.msra.mxu1 %v1029_v43  ;;  %983 = vmatpush3.bf16.msra.mxu0 %v1029_v43 }
  0x2a   : > { %994 = vmatprep.subr.bf16.mxu0 %v1069_v6 }
  0x2c   : > { %991 = vmatmul.mubr.msk.bf16.vlgmr.msra.gmra.mxu1 %vm648_vm6, %v1030_v44  ;;  %985 = vmatmul.mubr.msk.bf16.vlgmr.msra.gmra.mxu0 %vm648_vm6, %v1031_v45 }
  0x2d   : > { %996 = vmatprep.mubr.msk.bf16.mxu0 %vm1070_vm0, %v1069_v6 }
  0x8c   : > { %v700_v46 = vpop.permute.xlu0 %699  ;;  %v630_v60 = vpop.permute.xlu1 %629 }
  0x90   : > { %v705_v52 = vpop.permute.xlu0 %704  ;;  %v635_v0 = vpop.permute.xlu1 %634 }
  0x94   : > { %v780_v15 = vpop.permute.xlu0 %779  ;;  %v785_v19 = vpop.permute.xlu1 %784 }
  0xec   : > { %v749_v47 = vpop.f32.mrf.mxu1  ;;  %v686_v48 = vpop.f32.mrf.mxu0 }
  0xed   : > { %v750_v49 = vadd.f32 %v749_v47, %v700_v46  ;;  %v687_v62 = vadd.f32 %v686_v48, %v630_v60 }
  0xee   : > { %v992_v50 = vpop.f32.mrf.mxu1  ;;  %v986_v51 = vpop.f32.mrf.mxu0 }
  0xef   : > { %v969_v53 = vmul.f32 -1.442695, %v750_v49 }
  0xf0   : > { %v752_v54 = vpop.f32.mrf.mxu1  ;;  %v689_v55 = vpop.f32.mrf.mxu0 }
  0xf1   : > { %1033 = vpow2.f32 %v969_v53  ;;  %v753_v56 = vadd.f32 %v752_v54, %v705_v52  ;;  %v690_v2 = vadd.f32 %v689_v55, %v635_v0 }
  0xf2   : > { %v993_v57 = vpop.f32.mrf.mxu1  ;;  %v987_v58 = vpop.f32.mrf.mxu0 }
  0xf3   : > { %v970_v59 = vmul.f32 -1.442695, %v753_v56 }
  0xf5   : > { %1035 = vpow2.f32 %v970_v59 }
  0xf6   : > { %1037 = vtanh.f32 %v687_v62 }
  0xfe   : > { %v1034_v61 = vpop.eup %1033 }
  0xff   : > { %v764_v63 = vadd.f32 1.0, %v1034_v61 }
 0x101   : > { %1039 = vrcp.f32 %v764_v63 }
 0x102   : > { %v1036_v5 = vpop.eup %1035  ;;  %1041 = vtanh.f32 %v690_v2 }
 0x103   : > { %v765_v6 = vadd.f32 1.0, %v1036_v5  ;;  %v1038_v7 = vpop.eup %1037 }
 0x105   : > { %1043 = vrcp.f32 %v765_v6 }
 0x10e   : > { %v1040_v8 = vpop.eup %1039 }
 0x10f   : > { %v1042_v9 = vpop.eup %1041  ;;  %v770_v11 = vmul.f32 %v1040_v8, %v1038_v7 }
 0x112   : > { %v1044_v10 = vpop.eup %1043 }
 0x113   : > { %v771_v12 = vmul.f32 %v1044_v10, %v1042_v9 }
 0x115   : > { %v772_v13 = vpack.c.bf16 %v771_v12, %v770_v11 }
 0x117   : > { %995 = vmatpush3.bf16.msra.mxu0 %v772_v13 }
 0x11a   : > { %997 = vmatmul.mubr.msk.bf16.vlgmr.msra.gmra.mxu0 %vm648_vm6, %v1032_v14 }
 0x1da   : > { %v829_v16 = vpop.f32.mrf.mxu0 }
 0x1db   : > { %v830_v17 = vadd.f32 %v829_v16, %v780_v15 }
 0x1dc   : > { %v998_v18 = vpop.f32.mrf.mxu0 }
 0x1dd   : > { %836 = vst [vmem:[%s496_s15] sm:$0xff] %v830_v17 }
 0x1de   : > { %v832_v20 = vpop.f32.mrf.mxu0 }
 0x1df   : > { %v833_v21 = vadd.f32 %v832_v20, %v785_v19 }
 0x1e0   : > { %v999_v22 = vpop.f32.mrf.mxu0 }
 0x1e1   : > { %837 = vst [vmem:[%s496_s15 + $0x8] sm:$0xff] %v833_v21 }
 0x1e2 PF: > { %s43_s29 = sadd.s32 1, %s1067_s29   ;;  %s1294_s27 = smov %s1063_s28 }
 0x1e3   : > { %p40_p5 = scmp.ge.s32.totalorder %s43_s29, 4   ;;  %s1295_s28 = smov %s1297_s7 }
 0x1e5   :  { %42 = sbr.rel (!%p40_p5) target bundleno = 3 (0x3), region = 93 }

// kernel: down_conv_layer.1
= control target key start
LH: loop header
LB: loop body
LE: loop exit
PB: predicated region body
PF: predicated region fallthrough
CT: control target
= control target key end

     0   :  { %s769_s24 = smov 0   ;;  %s771_s25 = smov 0   ;;  %s839_s0 = inlined_call_operand.vmem [shape: bf16[2,16,128], index: 0, kind: input, shape index: {}]   ;;  %s840_s1 = inlined_call_operand.vmem [shape: bf16[16,16], index: 1, kind: input, shape index: {}]   ;;  %s841_s2 = inlined_call_operand.vmem [shape: bf16[16,16], index: 2, kind: input, shape index: {}]   ;;  %s842_s3 = inlined_call_operand.vmem [shape: f32[16,1], index: 3, kind: input, shape index: {}]   ;;  %s843_s4 = inlined_call_operand.vmem [shape: f32[16,1], index: 4, kind: input, shape index: {}]   ;;  %s844_s5 = inlined_call_operand.vmem [shape: bf16[16,16], index: 5, kind: input, shape index: {}]   ;;  %s845_s6 = inlined_call_operand.vmem [shape: f32[16,1], index: 6, kind: input, shape index: {}]   ;;  %s846_s7 = inlined_call_operand.vmem [shape: f32[2,16,128], index: 7, kind: output, shape index: {}]  }
   0x1   :  { %s773_s26 = smov 0  }
   0x2 LB: > { %s29_s27 = sadd.s32 1, %s720_s25  ;;  %p615_p0 = scmp.ge.s32.totalorder %s724_s26, 1  ;;  %s724_s26 = sphi %s773_s26, %s17_s26   ;;  %s720_s25 = sphi %s771_s25, %s848_s25   ;;  %s716_s24 = sphi %s769_s24, %s847_s24  }
   0x3   : > { %p31_p1 = scmp.ge.s32.totalorder %s29_s27, 2  ;;  %p256_p2 = scmp.lt.s32.totalorder %s724_s26, 3 }
   0x5   : > { %s850_s27 = smov (%p31_p1, %s29_s27), 0  ;;  %p257_p3 = pnand %p615_p0, %p256_p2 }
   0x6   : > { %p294_p4 = scmp.lt.s32.totalorder (!%p257_p3), %s716_s24, 1 }
   0x7   : > { %260 = sbr.rel (%p257_p3) target bundleno = 459 (0x1cb), region = 48 }
   0xc   : > { %v726_v0 = vmov 0.0   ;;  %vm727_vm0 = vmmov 0   ;;  %s852_s24 = smov (!%p294_p4, %s716_s24), 1  ;;  %v385_v1 = vld [vmem:[%s843_s4] sm:$0xff]  ;;  %v728_v2 = vmov 0   ;;  %v386_v4 = vld [vmem:[%s843_s4 + $0x8] sm:$0xff] }
   0xd   : > { %645 = vmatprep.subr.bf16.mxu1 %v726_v0  ;;  %647 = vmatprep.mubr.msk.bf16.mxu1 %vm727_vm0, %v726_v0  ;;  %v315_v3 = vld [vmem:[%s842_s3] sm:$0xff]  ;;  %s631_s9 = sshll.u32 %s852_s24, 3  ;;  %v316_v5 = vld [vmem:[%s842_s3 + $0x8] sm:$0xff]  ;;  %vm338_vm1 = vcmask 130048   ;;  %s632_s8 = sshll.u32 %s852_s24, 4 }
   0xe   : > { %639 = vmatprep.subr.bf16.mxu0 %v726_v0  ;;  %641 = vmatprep.mubr.msk.bf16.mxu0 %vm727_vm0, %v726_v0  ;;  %s301_s12 = scalar_lea.vmem %s839_s0, %s631_s9  ;;  %v687_v7 = vld [vmem:[%s841_s2] sm:$0xff]   ;;  %v466_v10 = vld [vmem:[%s845_s6 + $0x8] sm:$0xff]  ;;  %s309_s11 = scalar_lea.vmem %s846_s7, %s632_s8 }
   0xf   : > { %684 = vset.pattern.permute.xlu0 %v728_v2  ;;  %685 = vset.pattern.permute.xlu1 %v728_v2  ;;  %v686_v6 = vld [vmem:[%s301_s12] sm:$0xff]  }
  0x10   : > { %389 = vperm.xlu0 %684, %v385_v1   ;;  %319 = vperm.xlu1 %685, %v315_v3   ;;  %v688_v8 = vld [vmem:[%s840_s1] sm:$0xff]  }
  0x11   : > { %646 = vmatpush3.bf16.msra.mxu1 %v686_v6  ;;  %640 = vmatpush3.bf16.msra.mxu0 %v686_v6  ;;  %v465_v9 = vld [vmem:[%s845_s6] sm:$0xff] }
  0x12   : > { %651 = vmatprep.subr.bf16.mxu0 %v726_v0  ;;  %v689_v40 = vld [vmem:[%s844_s5] sm:$0xff]  }
  0x14   : > { %394 = vperm.xlu0 %684, %v386_v4   ;;  %324 = vperm.xlu1 %685, %v316_v5  }
  0x15   : > { %648 = vmatmul.mubr.msk.bf16.vlgmr.msra.gmra.mxu1 %vm338_vm1, %v687_v7  ;;  %642 = vmatmul.mubr.msk.bf16.vlgmr.msra.gmra.mxu0 %vm338_vm1, %v688_v8 }
  0x16   : > { %653 = vmatprep.mubr.msk.bf16.mxu0 %vm727_vm0, %v726_v0 }
  0x18   : > { %469 = vperm.xlu0 %684, %v465_v9   ;;  %474 = vperm.xlu1 %685, %v466_v10  }
  0x8b   : > { %v390_v11 = vpop.permute.xlu0 %389  ;;  %v320_v25 = vpop.permute.xlu1 %319 }
  0x8f   : > { %v395_v17 = vpop.permute.xlu0 %394  ;;  %v325_v29 = vpop.permute.xlu1 %324 }
  0x93   : > { %v470_v41 = vpop.permute.xlu0 %469  ;;  %v475_v45 = vpop.permute.xlu1 %474 }
  0xd5   : > { %v439_v12 = vpop.f32.mrf.mxu1  ;;  %v376_v13 = vpop.f32.mrf.mxu0 }
  0xd6   : > { %v440_v14 = vadd.f32 %v439_v12, %v390_v11  ;;  %v377_v27 = vadd.f32 %v376_v13, %v320_v25 }
  0xd7   : > { %v649_v15 = vpop.f32.mrf.mxu1  ;;  %v643_v16 = vpop.f32.mrf.mxu0 }
  0xd8   : > { %v625_v18 = vmul.f32 -1.442695, %v440_v14 }
  0xd9   : > { %v442_v19 = vpop.f32.mrf.mxu1  ;;  %v379_v20 = vpop.f32.mrf.mxu0 }
  0xda   : > { %690 = vpow2.f32 %v625_v18  ;;  %v443_v21 = vadd.f32 %v442_v19, %v395_v17  ;;  %v380_v30 = vadd.f32 %v379_v20, %v325_v29 }
  0xdb   : > { %v650_v22 = vpop.f32.mrf.mxu1  ;;  %v644_v23 = vpop.f32.mrf.mxu0 }
  0xdc   : > { %v626_v24 = vmul.f32 -1.442695, %v443_v21 }
  0xde   : > { %692 = vpow2.f32 %v626_v24 }
  0xdf   : > { %694 = vtanh.f32 %v377_v27 }
  0xe7   : > { %v691_v26 = vpop.eup %690 }
  0xe8   : > { %v454_v28 = vadd.f32 1.0, %v691_v26 }
  0xea   : > { %696 = vrcp.f32 %v454_v28 }
  0xeb   : > { %v693_v31 = vpop.eup %692  ;;  %698 = vtanh.f32 %v380_v30 }
  0xec   : > { %v455_v32 = vadd.f32 1.0, %v693_v31  ;;  %v695_v33 = vpop.eup %694 }
  0xee   : > { %700 = vrcp.f32 %v455_v32 }
  0xf7   : > { %v697_v34 = vpop.eup %696 }
  0xf8   : > { %v699_v35 = vpop.eup %698  ;;  %v460_v37 = vmul.f32 %v697_v34, %v695_v33 }
  0xfb   : > { %v701_v36 = vpop.eup %700 }
  0xfc   : > { %v461_v38 = vmul.f32 %v701_v36, %v699_v35 }
  0xfe   : > { %v462_v39 = vpack.c.bf16 %v461_v38, %v460_v37 }
 0x100   : > { %652 = vmatpush3.bf16.msra.mxu0 %v462_v39 }
 0x103   : > { %654 = vmatmul.mubr.msk.bf16.vlgmr.msra.gmra.mxu0 %vm338_vm1, %v689_v40 }
 0x1c3   : > { %v519_v42 = vpop.f32.mrf.mxu0 }
 0x1c4   : > { %v520_v43 = vadd.f32 %v519_v42, %v470_v41 }
 0x1c5   : > { %v655_v44 = vpop.f32.mrf.mxu0 }
 0x1c6   : > { %526 = vst [vmem:[%s309_s11] sm:$0xff] %v520_v43 }
 0x1c7   : > { %v522_v46 = vpop.f32.mrf.mxu0 }
 0x1c8   : > { %v523_v47 = vadd.f32 %v522_v46, %v475_v45 }
 0x1c9   : > { %v656_v48 = vpop.f32.mrf.mxu0 }
 0x1ca   : > { %527 = vst [vmem:[%s309_s11 + $0x8] sm:$0xff] %v523_v47 }
 0x1cb PF: > { %s17_s26 = sadd.s32 1, %s724_s26   ;;  %s847_s24 = smov %s720_s25 }
 0x1cc   : > { %p14_p5 = scmp.ge.s32.totalorder %s17_s26, 4   ;;  %s848_s25 = smov %s850_s27 }
 0x1ce   :  { %16 = sbr.rel (!%p14_p5) target bundleno = 2 (0x2), region = 78 }

</bundles_post_ra>
